<compile_context>
chip_gen: v5e
topology: v5e:2x2
jax: 0.10.0
libtpu: 0.0.40
codegen_flags: <defaults>
</compile_context>

<pallas_src>
import functools

import numpy as np
import jax
import jax.numpy as jnp
from jax import lax
from jax.experimental import pallas as pl
from jax.experimental.pallas import tpu as pltpu

KSIZE = 3
NEG_SLOPE = 0.2
LANE = 128
SUBLANE = 8
MXU_GRAN = 256                  # v6e/v7x MXU width; also a multiple of v5e's 128
M_TILE_MAX = 8192               # lane cap per tile (per perf review)
VMEM_BUDGET = 24 * 1024 * 1024  # per-step working-set target (v7x-safe)


def _round_up(x, m):
    return (x + m - 1) // m * m


def _num_tensorcores():
    """Best-effort: 2 TensorCores/chip on v7x-class parts, else 1."""
    try:
        kind = jax.devices()[0].device_kind.lower()
    except Exception:
        return 1
    return 2 if ("v7" in kind or "7x" in kind) else 1


def conv_block_kernel(x_hbm, w_ref, b_ref, o_ref, xbuf, sem, *, wp):
    """One lane-aligned spatial tile (all batches folded into the flat axis).

    x_hbm: (Cin_pad, m_in)          flat padded activations, left in HBM (pl.ANY)
    w_ref: (Cout, 9*Cin_pad)        pre-flattened weights (tap-major, ci-minor)
    b_ref: (Cout, 1)                bias (f32, broadcast over lanes)
    o_ref: (Cout, m_tile)           lane-dense output tile
    xbuf:  (Cin_pad, m_tile + halo) VMEM scratch for this tile's haloed window
    sem:   DMA semaphore
    """
    _, m_tile = o_ref.shape
    width = xbuf.shape[1]                          # m_tile + halo (static)

    # DMA this tile's haloed window straight from HBM (no wrapper-side copy).
    start = pl.multiple_of(pl.program_id(0) * m_tile, MXU_GRAN)
    cp = pltpu.make_async_copy(x_hbm.at[:, pl.ds(start, width)], xbuf, sem)
    cp.start()
    cp.wait()

    # In-kernel im2col: tap (kh, kw) of the flat channel-major input is a
    # static lane-offset slice by kh*Wp + kw.
    # TODO(synk): for large W (>~100) pad Wp to a multiple of 128 and hoist the
    # two kw lane shifts so all 9 windows become lane-aligned slices.
    windows = []
    for kh in range(KSIZE):
        for kw in range(KSIZE):
            off = kh * wp + kw                               # static Python int
            windows.append(xbuf[:, off:off + m_tile])        # (Cin_pad, m_tile)
    xcol = jnp.concatenate(windows, axis=0)                  # (9*Cin_pad, m_tile)

    # Single fused contraction: K = 9*Cin_pad, N (lanes) = m_tile (spatial),
    # f32 accumulation regardless of operand dtype.
    y = jnp.dot(w_ref[...], xcol, preferred_element_type=jnp.float32)
    y = y + b_ref[...]
    # LeakyReLU(0.2)
    o_ref[...] = jnp.where(y > 0, y, NEG_SLOPE * y).astype(o_ref.dtype)


@functools.partial(jax.jit, static_argnames=("mxu_dtype",))
def conv_block_forward(x_nchw, weight_oihw, bias, *, mxu_dtype=jnp.bfloat16):
    """Matches ConvBlock.forward: Conv2d(k=3, s=1, p=1) + LeakyReLU(0.2).

    x_nchw:      (N, Cin, H, W)
    weight_oihw: (Cout, Cin, 3, 3)   (PyTorch layout)
    bias:        (Cout,)
    mxu_dtype:   MXU operand dtype (default bf16 everywhere, f32 accumulation);
                 pass None to keep operands in x.dtype (exact f32 path).
    returns      (N, Cout, H, W) in x's dtype.
    """
    N, Cin, H, W = x_nchw.shape
    Cout = weight_oihw.shape[0]
    Hp, Wp = H + 2, W + 2

    in_dtype = x_nchw.dtype if mxu_dtype is None else mxu_dtype
    in_isz = jnp.dtype(in_dtype).itemsize
    out_isz = jnp.dtype(x_nchw.dtype).itemsize

    # Channels ride the sublane axis -> pad 4 -> 8 (not 4 -> 128 on lanes).
    cin_pad = _round_up(Cin, SUBLANE)
    k_flat = KSIZE * KSIZE * cin_pad
    m_valid = N * Hp * Wp

    # Right halo so every in-kernel tap slice (offset <= 2*Wp+2) is in-bounds
    # and static; keep it lane-aligned.
    halo = _round_up((KSIZE - 1) * Wp + (KSIZE - 1), LANE)

    # ---- size-derived, VMEM-capped tiling -----------------------------------
    per_lane = (cin_pad * in_isz            # xbuf scratch
                + 9 * cin_pad * in_isz      # xcol (im2col)
                + 2 * Cout * 4              # f32 matmul result + activation temp
                + 2 * Cout * out_isz)       # double-buffered output block
    fixed = cin_pad * halo * in_isz + 2 * Cout * (k_flat + 1) * 4
    cap = max(MXU_GRAN, min(M_TILE_MAX, (VMEM_BUDGET - fixed) // per_lane))
    cap_groups = max(1, cap // MXU_GRAN)

    m_groups = pl.cdiv(m_valid, MXU_GRAN)
    num_tiles = pl.cdiv(m_groups, cap_groups)         # tiles needed for VMEM
    num_tc = _num_tensorcores()
    if num_tc > 1 and m_groups >= num_tc:              # feed both TCs on v7x
        num_tiles = max(num_tiles, num_tc)
    m_tile_groups = pl.cdiv(m_groups, num_tiles)
    m_tile = m_tile_groups * MXU_GRAN
    num_tiles = pl.cdiv(m_groups, m_tile_groups)
    m_out = num_tiles * m_tile
    m_in = m_out + halo

    # NCHW -> (Cin, N, Hp, Wp): cast MXU-operand dtype, pad channels (zeros) +
    # spatial halo of 1, flatten (N, Hp, Wp) onto the lane axis, pad lane tail.
    x_c = jnp.transpose(x_nchw.astype(in_dtype), (1, 0, 2, 3))
    x_c = jnp.pad(x_c, ((0, cin_pad - Cin), (0, 0), (1, 1), (1, 1)))
    x_flat = x_c.reshape(cin_pad, m_valid)
    x_flat = jnp.pad(x_flat, ((0, 0), (0, m_in - m_valid)))

    # Weights: OIHW -> (Cout, kh, kw, ci_pad) -> (Cout, 9*cin_pad), tap-major /
    # channel-minor, matching the in-kernel window stacking order.
    w_p = jnp.pad(weight_oihw, ((0, 0), (0, cin_pad - Cin), (0, 0), (0, 0)))
    w_flat = jnp.transpose(w_p, (0, 2, 3, 1)).reshape(Cout, k_flat).astype(in_dtype)
    b2d = bias.reshape(Cout, 1).astype(jnp.float32)

    kernel = functools.partial(conv_block_kernel, wp=Wp)

    est_vmem = per_lane * m_tile + fixed
    cost = pl.CostEstimate(
        flops=2 * Cout * k_flat * m_out,
        bytes_accessed=(cin_pad * m_in * in_isz + Cout * k_flat * in_isz
                        + Cout * 4 + Cout * m_out * out_isz),
        transcendentals=0)

    out_flat = pl.pallas_call(
        kernel,
        out_shape=jax.ShapeDtypeStruct((Cout, m_out), x_nchw.dtype),
        grid_spec=pltpu.PrefetchScalarGridSpec(
            num_scalar_prefetch=0,
            grid=(num_tiles,),
            in_specs=[
                pl.BlockSpec(memory_space=pl.ANY),               # x stays in HBM
                pl.BlockSpec((Cout, k_flat), lambda i: (0, 0)),  # weights (resident)
                pl.BlockSpec((Cout, 1), lambda i: (0, 0)),       # bias (resident)
            ],
            out_specs=pl.BlockSpec((Cout, m_tile), lambda i: (0, i)),
            scratch_shapes=[
                pltpu.VMEM((cin_pad, m_tile + halo), in_dtype),
                pltpu.SemaphoreType.DMA(()),
            ],
        ),
        compiler_params=pltpu.CompilerParams(
            dimension_semantics=("parallel",),
            vmem_limit_bytes=int(min(56 * 1024 * 1024,
                                     max(32 * 1024 * 1024, 2 * est_vmem))),
        ),
        cost_estimate=cost,
    )(x_flat, w_flat, b2d)

    # (Cout, N*Hp*Wp) -> drop flat-padding / halo-row garbage -> (N, Cout, H, W).
    out = out_flat[:, :m_valid].reshape(Cout, N, Hp, Wp)[:, :, :H, :W]
    return jnp.transpose(out, (1, 0, 2, 3))


def reference_forward(x_nchw, weight_oihw, bias):
    """Pure-JAX reference (lax conv) for validation."""
    out = lax.conv_general_dilated(
        x_nchw.astype(jnp.float32),
        weight_oihw.astype(jnp.float32),
        window_strides=(1, 1),
        padding=((1, 1), (1, 1)),
        dimension_numbers=("NCHW", "OIHW", "NCHW"),
    )
    out = out + bias.reshape(1, -1, 1, 1)
    return jnp.where(out > 0, out, NEG_SLOPE * out)


if __name__ == "__main__":
    # ConvBlock(ndims=2, in_channels=4, out_channels=8)
    N, Cin, H, W = 2, 4, 16, 16
    Cout = 8

    key = jax.random.PRNGKey(0)
    kx, kw, kb = jax.random.split(key, 3)

    x = jax.random.normal(kx, (N, Cin, H, W), dtype=jnp.float32)
    # Deterministic synthetic parameters (shapes per nn.Conv2d(4, 8, 3, 1, 1)).
    weight = jax.random.normal(kw, (Cout, Cin, KSIZE, KSIZE), dtype=jnp.float32) * 0.1
    bias = jax.random.normal(kb, (Cout,), dtype=jnp.float32) * 0.1

    ref = jax.block_until_ready(reference_forward(x, weight, bias))

    # Exact f32-operand path (matches PyTorch numerics tightly).
    out_f32 = jax.block_until_ready(conv_block_forward(x, weight, bias, mxu_dtype=None))
    assert out_f32.shape == (N, Cout, H, W)
    assert np.allclose(np.asarray(out_f32), np.asarray(ref), atol=1e-4, rtol=1e-4)

    # Default path: bf16 MXU operands, f32 accumulation (all TPU generations).
    out = jax.block_until_ready(conv_block_forward(x, weight, bias))
    assert out.shape == (N, Cout, H, W)
    assert np.allclose(np.asarray(out), np.asarray(ref), atol=5e-2, rtol=5e-2)

    print("KERNEL_OK")
</pallas_src>

<mosaic_0001>
module attributes {stable_mosaic.version = 11 : i64} {
  func.func @conv_block_kernel(%arg0: i32, %arg1: memref<8x896xf32, #tpu.memory_space<any>>, %arg2: memref<8x72xf32, #tpu.memory_space<vmem>>, %arg3: memref<8x1xf32, #tpu.memory_space<vmem>>, %arg4: memref<8x768xf32, #tpu.memory_space<vmem>>, %arg5: memref<8x896xf32, #tpu.memory_space<vmem>>, %arg6: memref<!tpu.dma_semaphore, #tpu.memory_space<semaphore_mem>>) attributes {dimension_semantics = [#tpu.dimension_semantics<parallel>], iteration_bounds = array<i64: 1>, scalar_prefetch = 0 : i64, scratch_operands = 2 : i64, tpu.core_type = #tpu.core_type<tc>, window_params = [{}, {pipeline_mode = #tpu.pipeline_mode<synchronous>, transform_indices = @transform_1, window_bounds = array<i64: 8, 72>}, {pipeline_mode = #tpu.pipeline_mode<synchronous>, transform_indices = @transform_2, window_bounds = array<i64: 8, 1>}, {transform_indices = @transform_3, window_bounds = array<i64: 8, 768>}]} {
    %c768_i32 = arith.constant 768 : i32
    %0 = arith.muli %arg0, %c768_i32 : i32
    %1 = tpu.assume_multiple %0, 256 : i32
    %c0_i32 = arith.constant 0 : i32
    %2 = tpu.memref_slice %arg1[%c0_i32, %1] : memref<8x896xf32, #tpu.memory_space<any>> -> memref<8x896xf32, #tpu.memory_space<any>>
    tpu.enqueue_dma source(%2 : memref<8x896xf32, #tpu.memory_space<any>>) target(%arg5 : memref<8x896xf32, #tpu.memory_space<vmem>>) target_semaphore(%arg6 : memref<!tpu.dma_semaphore, #tpu.memory_space<semaphore_mem>>)
    %c0_i32_0 = arith.constant 0 : i32
    %3 = tpu.memref_slice %arg1[%c0_i32_0, %1] : memref<8x896xf32, #tpu.memory_space<any>> -> memref<8x896xf32, #tpu.memory_space<any>>
    tpu.wait_dma2 semaphore(%arg6 : memref<!tpu.dma_semaphore, #tpu.memory_space<semaphore_mem>>) src(%3 : memref<8x896xf32, #tpu.memory_space<any>>) dst(%arg5 : memref<8x896xf32, #tpu.memory_space<vmem>>)
    %c0 = arith.constant 0 : index
    %c0_1 = arith.constant 0 : index
    %4 = vector.load %arg5[%c0, %c0_1] : memref<8x896xf32, #tpu.memory_space<vmem>>, vector<8x768xf32>
    %c0_2 = arith.constant 0 : index
    %c1 = arith.constant 1 : index
    %5 = vector.load %arg5[%c0_2, %c1] : memref<8x896xf32, #tpu.memory_space<vmem>>, vector<8x768xf32>
    %c0_3 = arith.constant 0 : index
    %c2 = arith.constant 2 : index
    %6 = vector.load %arg5[%c0_3, %c2] : memref<8x896xf32, #tpu.memory_space<vmem>>, vector<8x768xf32>
    %c0_4 = arith.constant 0 : index
    %c18 = arith.constant 18 : index
    %7 = vector.load %arg5[%c0_4, %c18] : memref<8x896xf32, #tpu.memory_space<vmem>>, vector<8x768xf32>
    %c0_5 = arith.constant 0 : index
    %c19 = arith.constant 19 : index
    %8 = vector.load %arg5[%c0_5, %c19] : memref<8x896xf32, #tpu.memory_space<vmem>>, vector<8x768xf32>
    %c0_6 = arith.constant 0 : index
    %c20 = arith.constant 20 : index
    %9 = vector.load %arg5[%c0_6, %c20] : memref<8x896xf32, #tpu.memory_space<vmem>>, vector<8x768xf32>
    %c0_7 = arith.constant 0 : index
    %c36 = arith.constant 36 : index
    %10 = vector.load %arg5[%c0_7, %c36] : memref<8x896xf32, #tpu.memory_space<vmem>>, vector<8x768xf32>
    %c0_8 = arith.constant 0 : index
    %c37 = arith.constant 37 : index
    %11 = vector.load %arg5[%c0_8, %c37] : memref<8x896xf32, #tpu.memory_space<vmem>>, vector<8x768xf32>
    %c0_9 = arith.constant 0 : index
    %c38 = arith.constant 38 : index
    %12 = vector.load %arg5[%c0_9, %c38] : memref<8x896xf32, #tpu.memory_space<vmem>>, vector<8x768xf32>
    %13 = tpu.concatenate %4, %5, %6, %7, %8, %9, %10, %11, %12 in 0 : vector<8x768xf32>, vector<8x768xf32>, vector<8x768xf32>, vector<8x768xf32>, vector<8x768xf32>, vector<8x768xf32>, vector<8x768xf32>, vector<8x768xf32>, vector<8x768xf32> -> vector<72x768xf32>
    %c0_10 = arith.constant 0 : index
    %c0_11 = arith.constant 0 : index
    %14 = vector.load %arg2[%c0_10, %c0_11] : memref<8x72xf32, #tpu.memory_space<vmem>>, vector<8x72xf32>
    %cst = arith.constant dense<0.000000e+00> : vector<8x768xf32>
    %15 = tpu.matmul %14, %13, %cst {dimension_numbers = #tpu.dot_dimension_numbers<[1], [0], [0], [1], [0, 0, 1, 1], [], []>} : vector<8x72xf32>, vector<72x768xf32>, vector<8x768xf32> -> vector<8x768xf32>
    %c0_12 = arith.constant 0 : index
    %c0_13 = arith.constant 0 : index
    %16 = vector.load %arg3[%c0_12, %c0_13] : memref<8x1xf32, #tpu.memory_space<vmem>>, vector<8x1xf32>
    %17 = vector.broadcast %16 : vector<8x1xf32> to vector<8x768xf32>
    %18 = arith.addf %15, %17 : vector<8x768xf32>
    %cst_14 = arith.constant 0.000000e+00 : f32
    %19 = vector.broadcast %cst_14 : f32 to vector<8x768xf32>
    %20 = arith.cmpf ogt, %18, %19 : vector<8x768xf32>
    %cst_15 = arith.constant 2.000000e-01 : f32
    %21 = vector.broadcast %cst_15 : f32 to vector<8x768xf32>
    %22 = arith.mulf %21, %18 : vector<8x768xf32>
    %23 = arith.select %20, %18, %22 : vector<8x768xi1>, vector<8x768xf32>
    %c0_16 = arith.constant 0 : index
    %c0_17 = arith.constant 0 : index
    %24 = vector.load %arg4[%c0_16, %c0_17] : memref<8x768xf32, #tpu.memory_space<vmem>>, vector<8x768xf32>
    tpu.vector_store %arg4[%c0_16, %c0_17], %23 {strides = array<i32>} : memref<8x768xf32, #tpu.memory_space<vmem>>, vector<8x768xf32>,
    return
  }
  func.func @transform_1(%arg0: i32) -> (i32, i32) {
    %c0_i32 = arith.constant 0 : i32
    %c0_i32_0 = arith.constant 0 : i32
    %c0_i32_1 = arith.constant 0 : i32
    return %c0_i32, %c0_i32_0 : i32, i32
  }
  func.func @transform_2(%arg0: i32) -> (i32, i32) {
    %c0_i32 = arith.constant 0 : i32
    %c0_i32_0 = arith.constant 0 : i32
    %c0_i32_1 = arith.constant 0 : i32
    return %c0_i32, %c0_i32_0 : i32, i32
  }
  func.func @transform_3(%arg0: i32) -> (i32, i32) {
    %c0_i32 = arith.constant 0 : i32
    %c0_i32_0 = arith.constant 0 : i32
    return %c0_i32, %arg0 : i32, i32
  }
}

</mosaic_0001>

<bundles_post_ra>
// kernel: conv_block_forward.1
= control target key start
LH: loop header
LB: loop body
LE: loop exit
PB: predicated region body
PF: predicated region fallthrough
CT: control target
= control target key end

     0   :  { %s827_s0 = inlined_call_operand.vmem [shape: f32[8,896], index: 0, kind: input, shape index: {}]   ;;  %s828_s1 = inlined_call_operand.vmem [shape: f32[8,72], index: 1, kind: input, shape index: {}]   ;;  %s829_s2 = inlined_call_operand.vmem [shape: f32[8,1], index: 2, kind: input, shape index: {}]   ;;  %s830_s3 = inlined_call_operand.vmem [shape: f32[8,768], index: 3, kind: output, shape index: {}]  }
   0x1   :  { %v630_v0 = vld [vmem:[%s827_s0] sm:$0xff]  ;;  %v635_v1 = vld [vmem:[%s827_s0 + $0x8] sm:$0xff]  ;;  %v640_v2 = vld [vmem:[%s827_s0 + $0x10] sm:$0xff] }
   0x2   :  { %v645_v3 = vld [vmem:[%s827_s0 + $0x18] sm:$0xff]  ;;  %v650_v4 = vld [vmem:[%s827_s0 + $0x20] sm:$0xff]  ;;  %v655_v5 = vld [vmem:[%s827_s0 + $0x28] sm:$0xff] }
   0x3   :  { %v39_v6 = vld [vmem:[%s827_s0 + $0x30] sm:$0xff] }
   0x4   :  { %46 = vsyncadd [#allocation3], 896  ;;  %v494_v7 = vpack.i.bf16 %v655_v5, %v650_v4  ;;  %v474_v8 = vpack.i.bf16 %v635_v1, %v630_v0 }
   0x5   :  { %596 = dma.done.wait [#allocation3], 896 }
   0x6   :  { %597 = vsyncadd [#allocation3], 4294966400  ;;  %s598_s26 = smov 90   ;;  %s599_s27 = smov 91   ;;  %v479_v9 = vpack.i.bf16 %v645_v3, %v640_v2  ;;  %v589_v10 = vpack.i.bf16 %v39_v6, %v655_v5  ;;  %vm274_vm0 = vcmask 736256   ;;  %vm247_vm1 = vcmask 744448  }
   0x7   :  { %495 = vrot.lane.b32.xlu2 %v494_v7, %s598_s26  ;;  %475 = vrot.lane.b32.xlu0 %v474_v8, %s598_s26  ;;  %s600_s28 = smov 92   ;;  %s601_s0 = smov 108   ;;  %vm220_vm2 = vcmask 752640   ;;  %vm193_vm3 = vcmask 883712   ;;  %vm166_vm4 = vcmask 891904   ;;  %vm139_vm5 = vcmask 900096  }
   0x8   :  { %485 = vrot.lane.b32.xlu1 %v474_v8, %s599_s27  ;;  %s602_s29 = smov 109   ;;  %s603_s30 = smov 110   ;;  %vm112_vm6 = vcmask 1031168   ;;  %vm85_vm7 = vcmask 1039360   ;;  %vm294_vm8 = vcmask 588800  }
   0x9   :  { %s604_s4 = smov 126   ;;  %s605_s5 = smov 127  }
   0xf   :  { %480 = vrot.lane.b32.xlu0 %v479_v9, %s598_s26  ;;  %500 = vrot.lane.b32.xlu2 %v474_v8, %s600_s28 }
  0x10   :  { %490 = vrot.lane.b32.xlu1 %v479_v9, %s599_s27 }
  0x17   :  { %505 = vrot.lane.b32.xlu0 %v479_v9, %s600_s28  ;;  %515 = vrot.lane.b32.xlu2 %v474_v8, %s601_s0 }
  0x18   :  { %510 = vrot.lane.b32.xlu1 %v494_v7, %s599_s27 }
  0x1f   :  { %520 = vrot.lane.b32.xlu0 %v479_v9, %s601_s0  ;;  %530 = vrot.lane.b32.xlu2 %v474_v8, %s602_s29 }
  0x20   :  { %525 = vrot.lane.b32.xlu1 %v494_v7, %s600_s28 }
  0x27   :  { %535 = vrot.lane.b32.xlu0 %v479_v9, %s602_s29  ;;  %272 = vrot.lane.b32.xlu2 %v39_v6, %s598_s26 }
  0x28   :  { %540 = vrot.lane.b32.xlu1 %v494_v7, %s601_s0 }
  0x2f   :  { %555 = vrot.lane.b32.xlu2 %v494_v7, %s602_s29  ;;  %545 = vrot.lane.b32.xlu0 %v474_v8, %s603_s30 }
  0x30   :  { %550 = vrot.lane.b32.xlu1 %v479_v9, %s603_s30 }
  0x37   :  { %245 = vrot.lane.b32.xlu0 %v39_v6, %s599_s27  ;;  %565 = vrot.lane.b32.xlu2 %v479_v9, %s604_s4 }
  0x38   :  { %560 = vrot.lane.b32.xlu1 %v474_v8, %s604_s4 }
  0x3f   :  { %570 = vrot.lane.b32.xlu0 %v494_v7, %s603_s30  ;;  %575 = vrot.lane.b32.xlu2 %v474_v8, %s605_s5 }
  0x40   :  { %218 = vrot.lane.b32.xlu1 %v39_v6, %s600_s28 }
  0x47   :  { %580 = vrot.lane.b32.xlu0 %v479_v9, %s605_s5  ;;  %191 = vrot.lane.b32.xlu2 %v39_v6, %s601_s0 }
  0x48   :  { %585 = vrot.lane.b32.xlu1 %v494_v7, %s604_s4 }
  0x4f   :  { %79 = vrot.lane.b32.xlu0 %v650_v4, %s605_s5  ;;  %137 = vrot.lane.b32.xlu2 %v39_v6, %s603_s30 }
  0x50   :  { %164 = vrot.lane.b32.xlu1 %v39_v6, %s602_s29 }
  0x57   :  { %110 = vrot.lane.b32.xlu0 %v39_v6, %s604_s4 }
  0x58   :  { %590 = vrot.lane.b32.xlu1 %v589_v10, %s605_s5 }
  0x61   :  { %v668_v11 = vpop.permute.xlu2 %495 }
  0x62   :  { %v498_v27 = vunpack.i.h.bf16 %v668_v11  ;;  %v497_v31 = vunpack.i.l.bf16 %v668_v11 }
  0x69   :  { %v501_v12 = vpop.permute.xlu2 %500 }
  0x6a   :  { %v503_v16 = vunpack.i.h.bf16 %v501_v12  ;;  %v502_v17 = vunpack.i.l.bf16 %v501_v12 }
  0x6c   :  { %v221_v28 = vsel %vm220_vm2, %v502_v17, %v503_v16 }
  0x71   :  { %v670_v13 = vpop.permute.xlu2 %515 }
  0x72   :  { %v518_v23 = vunpack.i.h.bf16 %v670_v13  ;;  %v517_v24 = vunpack.i.l.bf16 %v670_v13 }
  0x74   :  { %v194_v32 = vsel %vm193_vm3, %v517_v24, %v518_v23 }
  0x79   :  { %v476_v14 = vpop.permute.xlu0 %475  ;;  %v672_v15 = vpop.permute.xlu2 %530 }
  0x7a   :  { %v478_v18 = vunpack.i.h.bf16 %v476_v14  ;;  %v477_v19 = vunpack.i.l.bf16 %v476_v14  ;;  %v486_v20 = vpop.permute.xlu1 %485  ;;  %v533_v29 = vunpack.i.h.bf16 %v672_v15  ;;  %v532_v30 = vunpack.i.l.bf16 %v672_v15 }
  0x7b   :  { %v488_v21 = vunpack.i.h.bf16 %v486_v20  ;;  %v487_v22 = vunpack.i.l.bf16 %v486_v20 }
  0x7c   :  { %v275_v25 = vsel %vm274_vm0, %v477_v19, %v478_v18  ;;  %v167_v41 = vsel %vm166_vm4, %v532_v30, %v533_v29 }
  0x7d   :  { %305 = vmatpush.msra.mxu0 %v275_v25  ;;  %v248_v26 = vsel %vm247_vm1, %v487_v22, %v488_v21 }
  0x7f   :  { %306 = vmatpush.msra.mxu0 %v248_v26 }
  0x81   :  { %v481_v33 = vpop.permute.xlu0 %480  ;;  %v273_v34 = vpop.permute.xlu2 %272  ;;  %307 = vmatpush.msra.mxu0 %v221_v28 }
  0x82   :  { %v483_v35 = vunpack.i.h.bf16 %v481_v33  ;;  %v482_v36 = vunpack.i.l.bf16 %v481_v33  ;;  %v491_v37 = vpop.permute.xlu1 %490  ;;  %v687_v38 = vsel %vm274_vm0, %v498_v27, %v273_v34 }
  0x83   :  { %v493_v39 = vunpack.i.h.bf16 %v491_v37  ;;  %v492_v40 = vunpack.i.l.bf16 %v491_v37  ;;  %308 = vmatpush.msra.mxu0 %v194_v32 }
  0x84   :  { %v276_v42 = vsel %vm274_vm0, %v478_v18, %v482_v36  ;;  %v277_v43 = vsel %vm274_vm0, %v482_v36, %v483_v35  ;;  %v278_v44 = vsel %vm274_vm0, %v483_v35, %v497_v31 }
  0x85   :  { %325 = vmatpush.msra.mxu1 %v276_v42  ;;  %345 = vmatpush.msra.mxu2 %v277_v43  ;;  %v250_v45 = vsel %vm247_vm1, %v492_v40, %v493_v39  ;;  %v249_v46 = vsel %vm247_vm1, %v488_v21, %v492_v40 }
  0x86   :  { %365 = vmatpush.msra.mxu3 %v278_v44  ;;  %309 = vmatpush.msra.mxu0 %v167_v41 }
  0x87   :  { %326 = vmatpush.msra.mxu1 %v249_v46  ;;  %346 = vmatpush.msra.mxu2 %v250_v45  ;;  %v746_v45 = vld [vmem:[%s828_s1] sm:$0xff] }
  0x88   :  { %v288_v46 = vld [vmem:[%s829_s2] sm:$0xff] }
  0x89   :  { %v506_v47 = vpop.permute.xlu0 %505  ;;  %v708_v60 = vpop.permute.xlu2 %555 }
  0x8a   :  { %v697_v48 = vpop.permute.xlu1 %510  ;;  %v508_v49 = vunpack.i.h.bf16 %v506_v47  ;;  %v507_v50 = vunpack.i.l.bf16 %v506_v47  ;;  %v557_v10 = vunpack.i.l.bf16 %v708_v60 }
  0x8b   :  { %v512_v51 = vunpack.i.l.bf16 %v697_v48  ;;  %v513_v43 = vunpack.i.h.bf16 %v697_v48 }
  0x8c   :  { %v222_v52 = vsel %vm220_vm2, %v503_v16, %v507_v50  ;;  %v223_v53 = vsel %vm220_vm2, %v507_v50, %v508_v49 }
  0x8d   :  { %327 = vmatpush.msra.mxu1 %v222_v52  ;;  %347 = vmatpush.msra.mxu2 %v223_v53  ;;  %v251_v54 = vsel %vm247_vm1, %v493_v39, %v512_v51  ;;  %v279_v52 = vsel %vm274_vm0, %v497_v31, %v498_v27  ;;  %v606_v53 = vmov 0  }
  0x8e   :  { %366 = vmatpush.msra.mxu3 %v251_v54  ;;  %594 = vset.pattern.permute.xlu2 %v606_v53 }
  0x8f   :  { %291 = vperm.xlu2 %594, %v288_v46   ;;  %595 = vset.pattern.permute.xlu0 %v606_v53 }
  0x91   :  { %v521_v55 = vpop.permute.xlu0 %520  ;;  %v724_v16 = vpop.permute.xlu2 %565 }
  0x92   :  { %v705_v56 = vpop.permute.xlu1 %525  ;;  %v523_v57 = vunpack.i.h.bf16 %v521_v55  ;;  %v522_v58 = vunpack.i.l.bf16 %v521_v55  ;;  %v568_v18 = vunpack.i.h.bf16 %v724_v16  ;;  %v252_v55 = vsel %vm247_vm1, %v512_v51, %v513_v43 }
  0x93   :  { %v527_v59 = vunpack.i.l.bf16 %v705_v56  ;;  %v528_v47 = vunpack.i.h.bf16 %v705_v56 }
  0x94   :  { %v195_v61 = vsel %vm193_vm3, %v518_v23, %v522_v58  ;;  %v196_v62 = vsel %vm193_vm3, %v522_v58, %v523_v57  ;;  %v567_v23 = vunpack.i.l.bf16 %v724_v16 }
  0x95   :  { %328 = vmatpush.msra.mxu1 %v195_v61  ;;  %348 = vmatpush.msra.mxu2 %v196_v62  ;;  %v224_v63 = vsel %vm220_vm2, %v508_v49, %v527_v59  ;;  %v225_v11 = vsel %vm220_vm2, %v527_v59, %v528_v47 }
  0x96   :  { %367 = vmatpush.msra.mxu3 %v224_v63  ;;  %v115_v30 = vsel %vm112_vm6, %v567_v23, %v568_v18 }
  0x99   :  { %v536_v6 = vpop.permute.xlu0 %535  ;;  %v576_v32 = vpop.permute.xlu2 %575 }
  0x9a   :  { %v715_v7 = vpop.permute.xlu1 %540  ;;  %v538_v8 = vunpack.i.h.bf16 %v536_v6  ;;  %v537_v9 = vunpack.i.l.bf16 %v536_v6  ;;  %v578_v33 = vunpack.i.h.bf16 %v576_v32  ;;  %v577_v34 = vunpack.i.l.bf16 %v576_v32 }
  0x9b   :  { %v542_v12 = vunpack.i.l.bf16 %v715_v7  ;;  %v543_v54 = vunpack.i.h.bf16 %v715_v7 }
  0x9c   :  { %v168_v13 = vsel %vm166_vm4, %v533_v29, %v537_v9  ;;  %v169_v14 = vsel %vm166_vm4, %v537_v9, %v538_v8  ;;  %v170_v17 = vsel %vm166_vm4, %v538_v8, %v557_v10  ;;  %v86_v42 = vsel %vm85_vm7, %v577_v34, %v578_v33 }
  0x9d   :  { %329 = vmatpush.msra.mxu1 %v168_v13  ;;  %349 = vmatpush.msra.mxu2 %v169_v14  ;;  %v197_v15 = vsel %vm193_vm3, %v523_v57, %v542_v12  ;;  %v198_v31 = vsel %vm193_vm3, %v542_v12, %v543_v54 }
  0x9e   :  { %368 = vmatpush.msra.mxu3 %v197_v15 }
  0xa0   :  { %369 = vmatpush.msra.mxu3 %v170_v17 }
  0xa1   :  { %v546_v19 = vpop.permute.xlu0 %545 }
  0xa2   :  { %v551_v20 = vpop.permute.xlu1 %550  ;;  %v548_v21 = vunpack.i.h.bf16 %v546_v19  ;;  %v547_v22 = vunpack.i.l.bf16 %v546_v19 }
  0xa3   :  { %v553_v24 = vunpack.i.h.bf16 %v551_v20  ;;  %v552_v25 = vunpack.i.l.bf16 %v551_v20 }
  0xa4   :  { %v140_v26 = vsel %vm139_vm5, %v547_v22, %v548_v21 }
  0xa5   :  { %310 = vmatpush.msra.mxu0 %v140_v26  ;;  %v141_v28 = vsel %vm139_vm5, %v548_v21, %v552_v25  ;;  %v142_v29 = vsel %vm139_vm5, %v552_v25, %v553_v24 }
  0xa6   :  { %330 = vmatpush.msra.mxu1 %v141_v28  ;;  %350 = vmatpush.msra.mxu2 %v142_v29 }
  0xa8   :  { %351 = vmatpush.msra.mxu2 %v115_v30 }
  0xa9   :  { %v246_v35 = vpop.permute.xlu0 %245 }
  0xaa   :  { %v561_v36 = vpop.permute.xlu1 %560  ;;  %v253_v12 = vsel %vm247_vm1, %v513_v43, %v246_v35 }
  0xab   :  { %v563_v37 = vunpack.i.h.bf16 %v561_v36  ;;  %v562_v39 = vunpack.i.l.bf16 %v561_v36 }
  0xad   :  { %v113_v40 = vsel %vm112_vm6, %v562_v39, %v563_v37  ;;  %v114_v41 = vsel %vm112_vm6, %v563_v37, %v567_v23 }
  0xae   :  { %311 = vmatpush.msra.mxu0 %v113_v40  ;;  %331 = vmatpush.msra.mxu1 %v114_v41 }
  0xb0   :  { %312 = vmatpush.msra.mxu0 %v86_v42 }
  0xb1   :  { %v741_v44 = vpop.permute.xlu0 %570 }
  0xb2   :  { %v572_v49 = vunpack.i.l.bf16 %v741_v44  ;;  %v219_v50 = vpop.permute.xlu1 %218  ;;  %313 = vmatpush.msra.mxu0 %v630_v0  ;;  %v558_v0 = vunpack.i.h.bf16 %v708_v60  ;;  %v573_v27 = vunpack.i.h.bf16 %v741_v44  ;;  %v192_v60 = vpop.permute.xlu2 %191 }
  0xb3   :  { %458 = vmatmul.msk.f32.vlgmr.msra.gmra.mxu0 %vm294_vm8, %v746_v45 }
  0xb4   :  { %385 = vmatpush.msrb.mxu0 %v279_v52  ;;  %v143_v57 = vsel %vm139_vm5, %v553_v24, %v572_v49  ;;  %v171_v62 = vsel %vm166_vm4, %v557_v10, %v558_v0  ;;  %v144_v59 = vsel %vm139_vm5, %v572_v49, %v573_v27 }
  0xb5   :  { %370 = vmatpush.msra.mxu3 %v143_v57 }
  0xb6   :  { %386 = vmatpush.msrb.mxu0 %v252_v55 }
  0xb8   :  { %387 = vmatpush.msrb.mxu0 %v225_v11 }
  0xb9   :  { %v581_v48 = vpop.permute.xlu0 %580 }
  0xba   :  { %388 = vmatpush.msrb.mxu0 %v198_v31  ;;  %v586_v51 = vpop.permute.xlu1 %585  ;;  %v583_v58 = vunpack.i.h.bf16 %v581_v48  ;;  %v582_v61 = vunpack.i.l.bf16 %v581_v48 }
  0xbb   :  { %v588_v63 = vunpack.i.h.bf16 %v586_v51  ;;  %v587_v56 = vunpack.i.l.bf16 %v586_v51 }
  0xbc   :  { %389 = vmatpush.msrb.mxu0 %v171_v62  ;;  %v87_v6 = vsel %vm85_vm7, %v578_v33, %v582_v61  ;;  %v88_v7 = vsel %vm85_vm7, %v582_v61, %v583_v58 }
  0xbd   :  { %332 = vmatpush.msra.mxu1 %v87_v6  ;;  %v116_v8 = vsel %vm112_vm6, %v568_v18, %v587_v56  ;;  %v117_v9 = vsel %vm112_vm6, %v587_v56, %v588_v63  ;;  %352 = vmatpush.msra.mxu2 %v88_v7 }
  0xbe   :  { %390 = vmatpush.msrb.mxu0 %v144_v59  ;;  %371 = vmatpush.msra.mxu3 %v116_v8 }
  0xbf   :  { %333 = vmatpush.msra.mxu1 %v635_v1  ;;  %353 = vmatpush.msra.mxu2 %v640_v2  ;;  %v226_v1 = vsel %vm220_vm2, %v528_v47, %v219_v50  ;;  %v138_v2 = vpop.permute.xlu2 %137 }
  0xc0   :  { %391 = vmatpush.msrb.mxu0 %v117_v9  ;;  %459 = vmatmul.msk.f32.vlgmr.msra.gmra.mxu1 %vm294_vm8, %v746_v45  ;;  %v145_v17 = vsel %vm139_vm5, %v573_v27, %v138_v2 }
  0xc1   :  { %405 = vmatpush.msrb.mxu1 %v687_v38  ;;  %v80_v10 = vpop.permute.xlu0 %79  ;;  %460 = vmatmul.msk.f32.vlgmr.msra.gmra.mxu2 %vm294_vm8, %v746_v45  ;;  %v199_v38 = vsel %vm193_vm3, %v543_v54, %v192_v60 }
  0xc2   :  { %v165_v13 = vpop.permute.xlu1 %164  ;;  %v89_v14 = vsel %vm85_vm7, %v583_v58, %v80_v10 }
  0xc3   :  { %406 = vmatpush.msrb.mxu1 %v253_v12  ;;  %372 = vmatpush.msra.mxu3 %v89_v14  ;;  %v172_v15 = vsel %vm166_vm4, %v558_v0, %v165_v13 }
  0xc5   :  { %407 = vmatpush.msrb.mxu1 %v226_v1  ;;  %373 = vmatpush.msra.mxu3 %v645_v3 }
  0xc6   :  { %461 = vmatmul.msk.f32.vlgmr.msra.gmra.mxu3 %vm294_vm8, %v746_v45 }
  0xc7   :  { %408 = vmatpush.msrb.mxu1 %v199_v38 }
  0xc9   :  { %409 = vmatpush.msrb.mxu1 %v172_v15  ;;  %v111_v16 = vpop.permute.xlu0 %110 }
  0xca   :  { %v591_v18 = vpop.permute.xlu1 %590  ;;  %v118_v19 = vsel %vm112_vm6, %v588_v63, %v111_v16 }
  0xcb   :  { %410 = vmatpush.msrb.mxu1 %v145_v17  ;;  %v593_v20 = vunpack.i.h.bf16 %v591_v18  ;;  %v592_v21 = vunpack.i.l.bf16 %v591_v18 }
  0xcd   :  { %411 = vmatpush.msrb.mxu1 %v118_v19  ;;  %v90_v3 = vsel %vm85_vm7, %v80_v10, %v592_v21  ;;  %v91_v22 = vsel %vm85_vm7, %v592_v21, %v593_v20 }
  0xce   :  { %392 = vmatpush.msrb.mxu0 %v90_v3 }
  0xcf   :  { %412 = vmatpush.msrb.mxu1 %v91_v22 }
  0xd0   :  { %393 = vmatpush.msrb.mxu0 %v650_v4 }
  0xd1   :  { %413 = vmatpush.msrb.mxu1 %v655_v5  ;;  %462 = vmatmul.msk.f32.vlgmr.msrb.gmra.mxu0 %vm294_vm8, %v746_v45 }
  0xd2   :  { %463 = vmatmul.msk.f32.vlgmr.msrb.gmra.mxu1 %vm294_vm8, %v746_v45 }
  0xe9   :  { %v292_v23 = vpop.permute.xlu2 %291 }
 0x130   :  { %v315_v24 = vpop.f32.mrf.mxu0 }
 0x131   :  { %v316_v25 = vadd.f32 %v315_v24, %v292_v23 }
 0x133   :  { %vm418_vm9 = vcmp.gt.f32.partialorder %v316_v25, 0.0  ;;  %v424_v26 = vmul.f32 0.2, %v316_v25 }
 0x135   :  { %v430_v28 = vsel %vm418_vm9, %v316_v25, %v424_v26 }
 0x136   :  { %436 = vst [vmem:[%s830_s3] sm:$0xff] %v430_v28 }
 0x13d   :  { %v335_v29 = vpop.f32.mrf.mxu1 }
 0x13e   :  { %v336_v4 = vadd.f32 %v335_v29, %v292_v23 }
 0x140   :  { %vm419_vm10 = vcmp.gt.f32.partialorder %v336_v4, 0.0  ;;  %v425_v5 = vmul.f32 0.2, %v336_v4 }
 0x142   :  { %v431_v30 = vsel %vm419_vm10, %v336_v4, %v425_v5 }
 0x143   :  { %437 = vst [vmem:[%s830_s3 + $0x8] sm:$0xff] %v431_v30 }
 0x144   :  { %v355_v32 = vpop.f32.mrf.mxu2 }
 0x145   :  { %v356_v33 = vadd.f32 %v355_v32, %v292_v23 }
 0x147   :  { %vm420_vm11 = vcmp.gt.f32.partialorder %v356_v33, 0.0  ;;  %v426_v34 = vmul.f32 0.2, %v356_v33 }
 0x149   :  { %v432_v35 = vsel %vm420_vm11, %v356_v33, %v426_v34  ;;  %v375_v36 = vpop.f32.mrf.mxu3 }
 0x14a   :  { %438 = vst [vmem:[%s830_s3 + $0x10] sm:$0xff] %v432_v35  ;;  %v376_v37 = vadd.f32 %v375_v36, %v292_v23 }
 0x14c   :  { %vm421_vm12 = vcmp.gt.f32.partialorder %v376_v37, 0.0  ;;  %v427_v39 = vmul.f32 0.2, %v376_v37 }
 0x14e   :  { %v433_v40 = vsel %vm421_vm12, %v376_v37, %v427_v39  ;;  %v395_v41 = vpop.f32.mrf.mxu0 }
 0x14f   :  { %v415_v42 = vpop.f32.mrf.mxu1  ;;  %439 = vst [vmem:[%s830_s3 + $0x18] sm:$0xff] %v433_v40  ;;  %v396_v43 = vadd.f32 %v395_v41, %v292_v23 }
 0x150   :  { %v416_v44 = vadd.f32 %v415_v42, %v292_v23 }
 0x151   :  { %vm422_vm13 = vcmp.gt.f32.partialorder %v396_v43, 0.0  ;;  %v428_v45 = vmul.f32 0.2, %v396_v43 }
 0x152   :  { %vm423_vm14 = vcmp.gt.f32.partialorder %v416_v44, 0.0  ;;  %v429_v46 = vmul.f32 0.2, %v416_v44 }
 0x153   :  { %v434_v47 = vsel %vm422_vm13, %v396_v43, %v428_v45 }
 0x154   :  { %v435_v49 = vsel %vm423_vm14, %v416_v44, %v429_v46  ;;  %440 = vst [vmem:[%s830_s3 + $0x20] sm:$0xff] %v434_v47 }
 0x155   :  { %441 = vst [vmem:[%s830_s3 + $0x28] sm:$0xff] %v435_v49 }
 0x156   :  { %446 = vsyncmov [#allocation3] }
 0x159   :  { %s447_s20 = vpop.sfrf %446 }
 0x15a   :  { %p464_p0 = scmp.ne.s32.totalorder %s447_s20, 0 }
 0x15c   :  { %451 = shalt.err (%p464_p0)  }

</bundles_post_ra>
